<compile_context>
chip_gen: v6e
topology: v6e:2x2x1
jax: 0.10.0
libtpu: 0.0.40
codegen_flags: <defaults>
</compile_context>

<pallas_src>
import functools

import jax
import jax.numpy as jnp
from jax import lax
from jax.experimental import pallas as pl
from jax.experimental.pallas import tpu as pltpu


def fused_mul_conv_bn_kernel(x_ref, w_ref, g_ref, bt_ref, o_ref,
                             y_buf, sum_ref, ssq_ref, a_ref, b_ref,
                             *, eps, tile, total_rows):
    p = pl.program_id(0)   # phase: 0 = matmul + stats, 1 = normalize + write
    i = pl.program_id(1)   # lane-tile index along the spatial axis

    @pl.when(p == 0)
    def _compute_phase():
        @pl.when(i == 0)
        def _init():
            sum_ref[...] = jnp.zeros_like(sum_ref)
            ssq_ref[...] = jnp.zeros_like(ssq_ref)

        # (C, C) @ (C, TILE) -> (C, TILE), spatial axis on lanes (MXU).
        y = jnp.dot(w_ref[...], x_ref[...], preferred_element_type=jnp.float32)
        off = pl.multiple_of(i * tile, tile)
        y_buf[:, pl.ds(off, tile)] = y
        # Per-channel stats: lane reductions (XLU slot).
        sum_ref[...] += jnp.sum(y, axis=1, keepdims=True)
        ssq_ref[...] += jnp.sum(y * y, axis=1, keepdims=True)

    @pl.when(p == 1)
    def _normalize_phase():
        @pl.when(i == 0)
        def _finalize_stats():
            inv_n = 1.0 / total_rows
            mean = sum_ref[...] * inv_n
            var = ssq_ref[...] * inv_n - mean * mean   # biased var (training BN)
            invstd = lax.rsqrt(var + eps)
            a = g_ref[...] * invstd
            a_ref[...] = a
            b_ref[...] = bt_ref[...] - mean * a

        off = pl.multiple_of(i * tile, tile)
        y = y_buf[:, pl.ds(off, tile)]
        # Single per-element FMA with per-channel (sublane-broadcast) params.
        o_ref[...] = y * a_ref[...] + b_ref[...]


def _lane_tile(r):
    # Largest lane tile (multiple of 128) that divides r; big tiles amortize
    # the ~0.35 us per-grid-step overhead.
    for t in (4096, 2048, 1024, 512, 256, 128):
        if r % t == 0:
            return t
    return r   # block equal to the full dim is always allowed


def module_forward(x35, x30, conv_w, gamma, beta, eps=1e-3):
    """x35: (1, C, 1, 1) scale, x30: (N, C, H, W) input, conv_w: (C, C, 1, 1)."""
    N, C, H, W = x30.shape
    R = N * H * W

    # Spatial-on-lanes layout (C, N*H*W); for N == 1 this transpose is free.
    x = jnp.transpose(x30, (1, 0, 2, 3)).reshape(C, R).astype(jnp.float32)
    # Fold the per-input-channel scale into the conv weight.
    w = (conv_w.reshape(C, C).astype(jnp.float32)
         * x35.reshape(1, C).astype(jnp.float32))
    g = gamma.reshape(C, 1).astype(jnp.float32)
    bt = beta.reshape(C, 1).astype(jnp.float32)

    tile = _lane_tile(R)
    n_tiles = R // tile

    # Whole Y (C x R f32) is kept in a VMEM scratch; at the module's full size
    # (1, 24, 112, 112) this is ~1.2 MB, far below VMEM limits on v5e/v6e/v7x.
    # TODO(synk): for very large R (C*R*4 beyond ~16 MiB) fall back to a
    # two-pass (stats pass + normalize pass) structure.
    kern = functools.partial(fused_mul_conv_bn_kernel,
                             eps=eps, tile=tile, total_rows=float(R))

    out_flat = pl.pallas_call(
        kern,
        out_shape=jax.ShapeDtypeStruct((C, R), jnp.float32),
        grid_spec=pltpu.PrefetchScalarGridSpec(
            num_scalar_prefetch=0,
            grid=(2, n_tiles),
            in_specs=[
                # X: stream tiles during phase 0; pin to tile 0 during phase 1
                # so it is not re-streamed from HBM.
                pl.BlockSpec((C, tile), lambda p, i: (0, i * (1 - p))),
                pl.BlockSpec((C, C), lambda p, i: (0, 0)),
                pl.BlockSpec((C, 1), lambda p, i: (0, 0)),
                pl.BlockSpec((C, 1), lambda p, i: (0, 0)),
            ],
            # Output: parked on tile 0 during phase 0 (nothing written yet),
            # streamed out tile-by-tile during phase 1 -> written to HBM once.
            out_specs=pl.BlockSpec((C, tile), lambda p, i: (0, i * p)),
            scratch_shapes=[
                pltpu.VMEM((C, R), jnp.float32),   # whole Y stays in VMEM
                pltpu.VMEM((C, 1), jnp.float32),   # per-channel sum
                pltpu.VMEM((C, 1), jnp.float32),   # per-channel sum of squares
                pltpu.VMEM((C, 1), jnp.float32),   # a = gamma * invstd
                pltpu.VMEM((C, 1), jnp.float32),   # b = beta - mean * a
            ],
        ),
        compiler_params=pltpu.CompilerParams(
            dimension_semantics=("arbitrary", "arbitrary")),
    )(x, w, g, bt)

    # Back to NCHW (free transpose for N == 1).
    return jnp.transpose(out_flat.reshape(C, N, H, W), (1, 0, 2, 3))


def reference_forward(x35, x30, conv_w, gamma, beta, eps=1e-3):
    """Pure-JAX reference mirroring PyTorch semantics (training-mode BN)."""
    x36 = x35 * x30                                        # broadcast mul
    wmat = conv_w.reshape(conv_w.shape[0], conv_w.shape[1])  # (Cout, Cin)
    x37 = jnp.einsum('nchw,oc->nohw', x36, wmat)           # 1x1 conv, no bias
    mean = jnp.mean(x37, axis=(0, 2, 3), keepdims=True)
    var = jnp.mean((x37 - mean) ** 2, axis=(0, 2, 3), keepdims=True)
    xhat = (x37 - mean) / jnp.sqrt(var + eps)
    return xhat * gamma.reshape(1, -1, 1, 1) + beta.reshape(1, -1, 1, 1)


if __name__ == "__main__":
    # Module channel count is fixed at 24 (Conv2d(24, 24)); shrink spatial dims
    # but keep R a multiple of 128 with several lane tiles (exercises both phases).
    N, C, H, W = 1, 24, 48, 48

    key = jax.random.PRNGKey(0)
    k1, k2, k3, k4, k5 = jax.random.split(key, 5)

    x30 = jax.random.normal(k1, (N, C, H, W), dtype=jnp.float32)
    x35 = jax.random.normal(k2, (1, C, 1, 1), dtype=jnp.float32)

    # Deterministic synthetic parameters (not a checkpoint load).
    conv_w = 0.1 * jax.random.normal(k3, (C, C, 1, 1), dtype=jnp.float32)
    gamma = 1.0 + 0.05 * jax.random.normal(k4, (C,), dtype=jnp.float32)
    beta = 0.05 * jax.random.normal(k5, (C,), dtype=jnp.float32)

    out = jax.block_until_ready(module_forward(x35, x30, conv_w, gamma, beta))
    ref = reference_forward(x35, x30, conv_w, gamma, beta)

    assert out.shape == (N, C, H, W)
    assert jnp.allclose(out, ref, atol=2e-3, rtol=2e-3), \
        f"mismatch vs reference, max abs err = {float(jnp.max(jnp.abs(out - ref)))}"

    print("KERNEL_OK")
</pallas_src>

<mosaic_0001>
module attributes {stable_mosaic.version = 11 : i64} {
  func.func @fused_mul_conv_bn_kernel(%arg0: i32, %arg1: i32, %arg2: memref<24x256xf32, #tpu.memory_space<vmem>>, %arg3: memref<24x24xf32, #tpu.memory_space<vmem>>, %arg4: memref<24x1xf32, #tpu.memory_space<vmem>>, %arg5: memref<24x1xf32, #tpu.memory_space<vmem>>, %arg6: memref<24x256xf32, #tpu.memory_space<vmem>>, %arg7: memref<24x2304xf32, #tpu.memory_space<vmem>>, %arg8: memref<24x1xf32, #tpu.memory_space<vmem>>, %arg9: memref<24x1xf32, #tpu.memory_space<vmem>>, %arg10: memref<24x1xf32, #tpu.memory_space<vmem>>, %arg11: memref<24x1xf32, #tpu.memory_space<vmem>>) attributes {dimension_semantics = [#tpu.dimension_semantics<arbitrary>, #tpu.dimension_semantics<arbitrary>], iteration_bounds = array<i64: 2, 9>, scalar_prefetch = 0 : i64, scratch_operands = 5 : i64, tpu.core_type = #tpu.core_type<tc>, window_params = [{transform_indices = @transform_0, window_bounds = array<i64: 24, 256>}, {pipeline_mode = #tpu.pipeline_mode<synchronous>, transform_indices = @transform_1, window_bounds = array<i64: 24, 24>}, {pipeline_mode = #tpu.pipeline_mode<synchronous>, transform_indices = @transform_2, window_bounds = array<i64: 24, 1>}, {pipeline_mode = #tpu.pipeline_mode<synchronous>, transform_indices = @transform_3, window_bounds = array<i64: 24, 1>}, {transform_indices = @transform_4, window_bounds = array<i64: 24, 256>}]} {
    %c0_i32 = arith.constant 0 : i32
    %0 = arith.cmpi eq, %arg0, %c0_i32 : i32
    %1 = arith.extui %0 : i1 to i32
    %c0_i32_0 = arith.constant 0 : i32
    %2 = arith.cmpi ne, %1, %c0_i32_0 : i32
    scf.if %2 {
      %c0_i32_2 = arith.constant 0 : i32
      %6 = arith.cmpi eq, %arg1, %c0_i32_2 : i32
      %7 = arith.extui %6 : i1 to i32
      %c0_i32_3 = arith.constant 0 : i32
      %8 = arith.cmpi ne, %7, %c0_i32_3 : i32
      scf.if %8 {
        %cst_18 = arith.constant 0.000000e+00 : f32
        %27 = vector.broadcast %cst_18 : f32 to vector<24x1xf32>
        %c0_19 = arith.constant 0 : index
        %c0_20 = arith.constant 0 : index
        %28 = vector.load %arg8[%c0_19, %c0_20] : memref<24x1xf32, #tpu.memory_space<vmem>>, vector<24x1xf32>
        tpu.vector_store %arg8[%c0_19, %c0_20], %27 {strides = array<i32>} : memref<24x1xf32, #tpu.memory_space<vmem>>, vector<24x1xf32>,
        %cst_21 = arith.constant 0.000000e+00 : f32
        %29 = vector.broadcast %cst_21 : f32 to vector<24x1xf32>
        %c0_22 = arith.constant 0 : index
        %c0_23 = arith.constant 0 : index
        %30 = vector.load %arg9[%c0_22, %c0_23] : memref<24x1xf32, #tpu.memory_space<vmem>>, vector<24x1xf32>
        tpu.vector_store %arg9[%c0_22, %c0_23], %29 {strides = array<i32>} : memref<24x1xf32, #tpu.memory_space<vmem>>, vector<24x1xf32>,
      } else {
      }
      %c0 = arith.constant 0 : index
      %c0_4 = arith.constant 0 : index
      %9 = vector.load %arg3[%c0, %c0_4] : memref<24x24xf32, #tpu.memory_space<vmem>>, vector<24x24xf32>
      %c0_5 = arith.constant 0 : index
      %c0_6 = arith.constant 0 : index
      %10 = vector.load %arg2[%c0_5, %c0_6] : memref<24x256xf32, #tpu.memory_space<vmem>>, vector<24x256xf32>
      %cst = arith.constant dense<0.000000e+00> : vector<24x256xf32>
      %11 = tpu.matmul %9, %10, %cst {dimension_numbers = #tpu.dot_dimension_numbers<[1], [0], [0], [1], [0, 0, 1, 1], [], []>} : vector<24x24xf32>, vector<24x256xf32>, vector<24x256xf32> -> vector<24x256xf32>
      %c256_i32 = arith.constant 256 : i32
      %12 = arith.muli %arg1, %c256_i32 : i32
      %13 = tpu.assume_multiple %12, 256 : i32
      %c0_7 = arith.constant 0 : index
      %14 = arith.index_cast %13 : i32 to index
      %15 = vector.load %arg7[%c0_7, %14] : memref<24x2304xf32, #tpu.memory_space<vmem>>, vector<24x256xf32>
      tpu.vector_store %arg7[%c0_7, %14], %11 {strides = array<i32>} : memref<24x2304xf32, #tpu.memory_space<vmem>>, vector<24x256xf32>,
      %c0_8 = arith.constant 0 : index
      %c0_9 = arith.constant 0 : index
      %16 = vector.load %arg8[%c0_8, %c0_9] : memref<24x1xf32, #tpu.memory_space<vmem>>, vector<24x1xf32>
      %cst_10 = arith.constant dense<0.000000e+00> : vector<24xf32>
      %17 = vector.multi_reduction <add>, %11, %cst_10 [1] : vector<24x256xf32> to vector<24xf32>
      %18 = vector.shape_cast %17 : vector<24xf32> to vector<24x1xf32>
      %19 = arith.addf %16, %18 : vector<24x1xf32>
      %c0_11 = arith.constant 0 : index
      %c0_12 = arith.constant 0 : index
      %20 = vector.load %arg8[%c0_11, %c0_12] : memref<24x1xf32, #tpu.memory_space<vmem>>, vector<24x1xf32>
      tpu.vector_store %arg8[%c0_11, %c0_12], %19 {strides = array<i32>} : memref<24x1xf32, #tpu.memory_space<vmem>>, vector<24x1xf32>,
      %c0_13 = arith.constant 0 : index
      %c0_14 = arith.constant 0 : index
      %21 = vector.load %arg9[%c0_13, %c0_14] : memref<24x1xf32, #tpu.memory_space<vmem>>, vector<24x1xf32>
      %22 = arith.mulf %11, %11 : vector<24x256xf32>
      %cst_15 = arith.constant dense<0.000000e+00> : vector<24xf32>
      %23 = vector.multi_reduction <add>, %22, %cst_15 [1] : vector<24x256xf32> to vector<24xf32>
      %24 = vector.shape_cast %23 : vector<24xf32> to vector<24x1xf32>
      %25 = arith.addf %21, %24 : vector<24x1xf32>
      %c0_16 = arith.constant 0 : index
      %c0_17 = arith.constant 0 : index
      %26 = vector.load %arg9[%c0_16, %c0_17] : memref<24x1xf32, #tpu.memory_space<vmem>>, vector<24x1xf32>
      tpu.vector_store %arg9[%c0_16, %c0_17], %25 {strides = array<i32>} : memref<24x1xf32, #tpu.memory_space<vmem>>, vector<24x1xf32>,
    } else {
    }
    %c1_i32 = arith.constant 1 : i32
    %3 = arith.cmpi eq, %arg0, %c1_i32 : i32
    %4 = arith.extui %3 : i1 to i32
    %c0_i32_1 = arith.constant 0 : i32
    %5 = arith.cmpi ne, %4, %c0_i32_1 : i32
    scf.if %5 {
      %c0_i32_2 = arith.constant 0 : i32
      %6 = arith.cmpi eq, %arg1, %c0_i32_2 : i32
      %7 = arith.extui %6 : i1 to i32
      %c0_i32_3 = arith.constant 0 : i32
      %8 = arith.cmpi ne, %7, %c0_i32_3 : i32
      scf.if %8 {
        %c0_10 = arith.constant 0 : index
        %c0_11 = arith.constant 0 : index
        %20 = vector.load %arg8[%c0_10, %c0_11] : memref<24x1xf32, #tpu.memory_space<vmem>>, vector<24x1xf32>
        %cst = arith.constant 4.34027781E-4 : f32
        %21 = vector.broadcast %cst : f32 to vector<24x1xf32>
        %22 = arith.mulf %20, %21 : vector<24x1xf32>
        %c0_12 = arith.constant 0 : index
        %c0_13 = arith.constant 0 : index
        %23 = vector.load %arg9[%c0_12, %c0_13] : memref<24x1xf32, #tpu.memory_space<vmem>>, vector<24x1xf32>
        %cst_14 = arith.constant 4.34027781E-4 : f32
        %24 = vector.broadcast %cst_14 : f32 to vector<24x1xf32>
        %25 = arith.mulf %23, %24 : vector<24x1xf32>
        %26 = arith.mulf %22, %22 : vector<24x1xf32>
        %27 = arith.subf %25, %26 : vector<24x1xf32>
        %cst_15 = arith.constant 1.000000e-03 : f32
        %28 = vector.broadcast %cst_15 : f32 to vector<24x1xf32>
        %29 = arith.addf %27, %28 : vector<24x1xf32>
        %30 = math.rsqrt %29 : vector<24x1xf32>
        %c0_16 = arith.constant 0 : index
        %c0_17 = arith.constant 0 : index
        %31 = vector.load %arg4[%c0_16, %c0_17] : memref<24x1xf32, #tpu.memory_space<vmem>>, vector<24x1xf32>
        %32 = arith.mulf %31, %30 : vector<24x1xf32>
        %c0_18 = arith.constant 0 : index
        %c0_19 = arith.constant 0 : index
        %33 = vector.load %arg10[%c0_18, %c0_19] : memref<24x1xf32, #tpu.memory_space<vmem>>, vector<24x1xf32>
        tpu.vector_store %arg10[%c0_18, %c0_19], %32 {strides = array<i32>} : memref<24x1xf32, #tpu.memory_space<vmem>>, vector<24x1xf32>,
        %c0_20 = arith.constant 0 : index
        %c0_21 = arith.constant 0 : index
        %34 = vector.load %arg5[%c0_20, %c0_21] : memref<24x1xf32, #tpu.memory_space<vmem>>, vector<24x1xf32>
        %35 = arith.mulf %22, %32 : vector<24x1xf32>
        %36 = arith.subf %34, %35 : vector<24x1xf32>
        %c0_22 = arith.constant 0 : index
        %c0_23 = arith.constant 0 : index
        %37 = vector.load %arg11[%c0_22, %c0_23] : memref<24x1xf32, #tpu.memory_space<vmem>>, vector<24x1xf32>
        tpu.vector_store %arg11[%c0_22, %c0_23], %36 {strides = array<i32>} : memref<24x1xf32, #tpu.memory_space<vmem>>, vector<24x1xf32>,
      } else {
      }
      %c256_i32 = arith.constant 256 : i32
      %9 = arith.muli %arg1, %c256_i32 : i32
      %10 = tpu.assume_multiple %9, 256 : i32
      %c0 = arith.constant 0 : index
      %11 = arith.index_cast %10 : i32 to index
      %12 = vector.load %arg7[%c0, %11] : memref<24x2304xf32, #tpu.memory_space<vmem>>, vector<24x256xf32>
      %c0_4 = arith.constant 0 : index
      %c0_5 = arith.constant 0 : index
      %13 = vector.load %arg10[%c0_4, %c0_5] : memref<24x1xf32, #tpu.memory_space<vmem>>, vector<24x1xf32>
      %14 = vector.broadcast %13 : vector<24x1xf32> to vector<24x256xf32>
      %15 = arith.mulf %12, %14 : vector<24x256xf32>
      %c0_6 = arith.constant 0 : index
      %c0_7 = arith.constant 0 : index
      %16 = vector.load %arg11[%c0_6, %c0_7] : memref<24x1xf32, #tpu.memory_space<vmem>>, vector<24x1xf32>
      %17 = vector.broadcast %16 : vector<24x1xf32> to vector<24x256xf32>
      %18 = arith.addf %15, %17 : vector<24x256xf32>
      %c0_8 = arith.constant 0 : index
      %c0_9 = arith.constant 0 : index
      %19 = vector.load %arg6[%c0_8, %c0_9] : memref<24x256xf32, #tpu.memory_space<vmem>>, vector<24x256xf32>
      tpu.vector_store %arg6[%c0_8, %c0_9], %18 {strides = array<i32>} : memref<24x256xf32, #tpu.memory_space<vmem>>, vector<24x256xf32>,
    } else {
    }
    return
  }
  func.func @transform_0(%arg0: i32, %arg1: i32) -> (i32, i32) {
    %c1_i32 = arith.constant 1 : i32
    %0 = arith.subi %c1_i32, %arg0 : i32
    %1 = arith.muli %arg1, %0 : i32
    %c0_i32 = arith.constant 0 : i32
    %c0_i32_0 = arith.constant 0 : i32
    return %c0_i32, %1 : i32, i32
  }
  func.func @transform_1(%arg0: i32, %arg1: i32) -> (i32, i32) {
    %c0_i32 = arith.constant 0 : i32
    %c0_i32_0 = arith.constant 0 : i32
    %c0_i32_1 = arith.constant 0 : i32
    return %c0_i32, %c0_i32_0 : i32, i32
  }
  func.func @transform_2(%arg0: i32, %arg1: i32) -> (i32, i32) {
    %c0_i32 = arith.constant 0 : i32
    %c0_i32_0 = arith.constant 0 : i32
    %c0_i32_1 = arith.constant 0 : i32
    return %c0_i32, %c0_i32_0 : i32, i32
  }
  func.func @transform_3(%arg0: i32, %arg1: i32) -> (i32, i32) {
    %c0_i32 = arith.constant 0 : i32
    %c0_i32_0 = arith.constant 0 : i32
    %c0_i32_1 = arith.constant 0 : i32
    return %c0_i32, %c0_i32_0 : i32, i32
  }
  func.func @transform_4(%arg0: i32, %arg1: i32) -> (i32, i32) {
    %0 = arith.muli %arg1, %arg0 : i32
    %c0_i32 = arith.constant 0 : i32
    %c0_i32_0 = arith.constant 0 : i32
    return %c0_i32, %0 : i32, i32
  }
}

</mosaic_0001>

<bundles_post_ra>
// kernel: tpu_custom_call.1
= control target key start
LH: loop header
LB: loop body
LE: loop exit
PB: predicated region body
PF: predicated region fallthrough
CT: control target
= control target key end

     0   :  { %9 = vsyncpa [#allocation8], 0  ;;  %s1232_s0 = inlined_call_operand.hbm [shape: f32[24,2304], index: 0, kind: input, shape index: {}]   ;;  %s1233_s1 = inlined_call_operand.vmem [shape: f32[24,24], index: 1, kind: input, shape index: {}]   ;;  %s1234_s2 = inlined_call_operand.vmem [shape: f32[24,1], index: 2, kind: input, shape index: {}]   ;;  %s1235_s3 = inlined_call_operand.vmem [shape: f32[24,1], index: 3, kind: input, shape index: {}]   ;;  %s1236_s4 = inlined_call_operand.hbm [shape: f32[24,2304], index: 4, kind: output, shape index: {}]  }
   0x1   :  { %11 = vsyncpa [#allocation8 + $0x1], 0 }
   0x2   :  { %12 = vsyncpa [#allocation9], 0 }
   0x3   :  { %14 = vsyncpa [#allocation9 + $0x1], 0  ;;  %s972_s15 = smov 0   ;;  %s974_s16 = smov 0  }
   0x4   :  { %s976_s17 = smov 0   ;;  %s978_s18 = smov 0  }
   0x5   :  { %s980_s19 = smov 0   ;;  %s982_s20 = smov 0  }
   0x6   :  { %s984_s21 = smov 0   ;;  %s986_s22 = smov 0  }
   0x7   :  { %s988_s23 = smov 0   ;;  %s990_s24 = smov 0  }
   0x8   :  { %s992_s25 = smov 0  }
   0x9 LB: > { %1241 = sst [smem:[#allocation13_spill]] %s926_s23  ;;  %s634_s26 = sadd.s32 4294967295, %s934_s25   ;;  %s934_s25 = sphi %s992_s25, %s20_s25   ;;  %s930_s24 = sphi %s990_s24, %s1254_s24   ;;  %s926_s23 = sphi %s988_s23, %s1253_s23   ;;  %s922_s22 = sphi %s986_s22, %s1252_s22   ;;  %s918_s21 = sphi %s984_s21, %s1251_s21   ;;  %s914_s20 = sphi %s982_s20, %s1260_s20   ;;  %s910_s19 = sphi %s980_s19, %s1259_s19   ;;  %s906_s18 = sphi %s978_s18, %s1258_s18   ;;  %s902_s17 = sphi %s976_s17, %s1257_s17   ;;  %s898_s16 = sphi %s974_s16, %s1256_s16   ;;  %s894_s15 = sphi %s972_s15, %s1255_s15  }
   0xa   : > { %1242 = sst [smem:[#allocation14_spill]] %s930_s24  ;;  %s29_s28 = sadd.s32 1, %s926_s23 }
   0xb   : > { %s32_s29 = sadd.s32 1, %s930_s24  ;;  %p30_p0 = scmp.ge.s32.totalorder %s29_s28, 9 }
   0xc   : > { %s36_s30 = ssub.s32 1, %s930_s24  ;;  %s43_s6 = sadd.s32 1, %s914_s20 }
   0xd   : > { %s1031_s5 = smul.u32 %s926_s23, %s36_s30  ;;  %s1262_s28 = smov (%p30_p0, %s29_s28), 0 }
   0xe   : > { %1243 = sst [smem:[#allocation15_spill]] %s1262_s28  ;;  %s1264_s29 = smov (!%p30_p0, %s32_s29), %s930_s24 }
   0xf   : > { %p50_p1 = scmp.ne.s32.totalorder %s914_s20, %s910_s19  ;;  %p51_p2 = scmp.eq.s32.totalorder %s934_s25, 0 }
  0x10   : > { %p34_p3 = scmp.ge.s32.totalorder %s1264_s29, 2  ;;  %p56_p4 = scmp.ne.s32.totalorder %s910_s19, %s906_s18 }
  0x11   : > { %p1041_p5 = por %p51_p2, %p50_p1  ;;  %p57_p6 = scmp.eq.s32.totalorder %s634_s26, 0 }
  0x12   : > { %s1266_s29 = smov (%p34_p3, %s1264_s29), 0  ;;  %s129_s9 = smul.u32 %s926_s23, %s930_s24 }
  0x13   : > { %1245 = sst [smem:[#allocation16_spill]] %s1266_s29  ;;  %p1047_p7 = por %p57_p6, %p56_p4 }
  0x14   : > { %s38_s10 = ssub.s32 1, %s1266_s29  ;;  %s130_s11 = smul.u32 %s1266_s29, %s1262_s28 }
  0x15   : > { %s39_s12 = smul.u32 %s38_s10, %s1262_s28  ;;  %s134_s13 = sadd.s32 1, %s902_s17 }
  0x16   : > { %s131_s14 = ssub.s32 %s129_s9, %s130_s11  ;;  %p144_p8 = scmp.ne.s32.totalorder %s902_s17, %s898_s16 }
  0x17   : > { %s40_s18 = ssub.s32 %s1031_s5, %s39_s12  ;;  %p132_p9 = scmp.eq.s32.totalorder %s131_s14, 0 }
  0x18   : > { %p41_p10 = scmp.eq.s32.totalorder %s40_s18, 0  ;;  %p145_p11 = scmp.eq.s32.totalorder %s634_s26, 17 }
  0x19   : > { %s1062_s30 = scalar_select %p132_p9, %s902_s17, %s134_s13  }
  0x1a   : > { %s1065_s27 = scalar_select %p41_p10, %s914_s20, %s43_s6  }
  0x1b   : > { %p1067_p12 = por %p145_p11, %p144_p8  ;;  %p150_p13 = scmp.ne.s32.totalorder %s898_s16, %s894_s15 }
  0x1c   : > { %s1248_s10 = sadd.s32 4294967294, %s934_s25   ;;  %p679_p1 = scmp.lt.s32.totalorder %s934_s25, 18 }
  0x1d   : > { %p151_p0 = scmp.eq.s32.totalorder %s1248_s10, 17  ;;  %s180_s9 = sand.u32 1, %s914_s20  }
  0x1e   : > { %s664_s12 = smul.u32 48, %s180_s9  ;;  %s656_s26 = sshll.u32 %s1031_s5, 8 }
  0x1f   : > { %p1077_p2 = por %p151_p0, %p150_p13  ;;  %s192_s6 = scalar_lea.hbm %s1232_s0, %s656_s26 }
  0x20   : > { %p1087_p3 = pnand %p679_p1, %p1041_p5  ;;  %s184_s29 = scalar_lea.vmem [#allocation7], %s664_s12 }
  0x21   : > { %s193_s10 = sshll.u32 %s184_s29, 4  ;;  %p640_p4 = scmp.ge.s32.totalorder %s934_s25, 1  ;;  %s194_s10 = int_to_ptr.vmem [resolvable:$true] %s193_s10 }
  0x22   : > { %s181_s28 = scalar_lea.sflag [#allocation8], %s180_s9  ;;  %p788_p6 = pneg %p1087_p3 }
  0x23   : > { %s799_s23 = scalar_lea.vmem %s194_s10, 768  ;;  %s936_s5 = smov [#allocation7]  }
  0x24   : > { %p800_p8 = scmp.ne.s32.totalorder %s194_s10, %s799_s23  ;;  %s804_s14 = sshll.u32 %s936_s5, 4  ;;  %s805_s14 = int_to_ptr.vmem [resolvable:$false] %s804_s14 }
  0x25   : > { %s806_s7 = scalar_lea.vmem %s805_s14, 1536  ;;  %p807_p5 = scmp.lt.s32.totalorder %s194_s10, %s805_s14 }
  0x26   : > { %p802_p9 = pnand %p800_p8, %p788_p6  ;;  %p808_p11 = scmp.lt.s32.totalorder %s806_s7, %s799_s23 }
  0x28   : > { %p803_p10 = pneg %p802_p9  ;;  %p809_p13 = por %p808_p11, %p807_p5 }
  0x2a   : > { %p810_p0 = pnand %p809_p13, %p803_p10 }
  0x2c   : > { %813 = shalt.err (!%p810_p0)
}
  0x2d   : > { %s937_s12 = smov 2304   ;;  %s938_s29 = smov 256  }
  0x2e   : > { %s939_s9 = smov 16   ;;  %p201_p1 = scmp.lt.s32.totalorder %s934_s25, 19 }
  0x2f   : > { %674 = dma.hbm_to_vmem [thread:$0]  (!%p1087_p3), %s192_s6, 768, %s194_s10, %s181_s28, %s937_s12, %s938_s29, %s939_s9  }
  0x30   : > { %p202_p6 = pnand %p640_p4, %p201_p1 }
  0x31   : > { %s207_s26 = sand.u32 (!%p202_p6), 1, %s910_s19  }
  0x32   : > { %205 = sbr.rel (%p202_p6) target bundleno = 636 (0x27c), region = 36  ;;  %s208_s23 = scalar_lea.sflag (!%p202_p6), [#allocation8], %s207_s26 }
  0x33   : > { %s665_s13 = smul.u32 (!%p202_p6), 48, %s207_s26 }
  0x35   : > { %s211_s5 = scalar_lea.vmem (!%p202_p6), [#allocation7], %s665_s13 }
  0x37   : > { %885 = dma.done.wait (%p1047_p7), %s208_s23, 768  }
  0x38   : > { %887 = vsyncadd (%p1047_p7), %s208_s23, 4294966528  ;;  %s233_s14 = sand.u32 1, %s898_s16   ;;  %p641_p3 = scmp.ne.s32.totalorder %s922_s22, 0 }
  0x39   : > { %s666_s28 = smul.u32 48, %s233_s14  ;;  %p642_p4 = scmp.ne.s32.totalorder (!%p641_p3), %s918_s21, 0 }
  0x3a   : > { %244 = sbr.rel (%p641_p3) target bundleno = 428 (0x1ac), region = 44 }
  0x3b   : > { %s1107_s6 = scalar_lea.vmem [#allocation10], %s666_s28 }
  0x3f   : > { %248 = sbr.rel (%p642_p4) target bundleno = 72 (0x48), region = 48 }
  0x44   : > { %vm249_vm0 = vcmask 7168   ;;  %v940_v0 = vmov 0.0  }
  0x45   : > { %250 = vst.msk [vmem:[#allocation3] sm:$0xff] %vm249_vm0, %v940_v0  ;;  %251 = vst.msk [vmem:[#allocation3 + $0x8] sm:$0xff] %vm249_vm0, %v940_v0 }
  0x46   : > { %252 = vst.msk [vmem:[#allocation3 + $0x10] sm:$0xff] %vm249_vm0, %v940_v0  ;;  %253 = vst.msk [vmem:[#allocation4] sm:$0xff] %vm249_vm0, %v940_v0 }
  0x47   : > { %254 = vst.msk [vmem:[#allocation4 + $0x8] sm:$0xff] %vm249_vm0, %v940_v0  ;;  %255 = vst.msk [vmem:[#allocation4 + $0x10] sm:$0xff] %vm249_vm0, %v940_v0 }
  0x48 PF: > { %v264_v1 = vld [vmem:[%s211_s5 + $0x28] sm:$0xff]  ;;  %v263_v2 = vld [vmem:[%s211_s5 + $0x20] sm:$0xff]  ;;  %v262_v3 = vld [vmem:[%s211_s5 + $0x18] sm:$0xff]  ;;  %vm265_vm1 = vcmask 195584   ;;  %v941_v9 = vmov 0.0   ;;  %s646_s9 = sshll.u32 %s918_s21, 8 }
  0x49   : > { %301 = vmatprep.subr.mxu0 %v264_v1  ;;  %658 = vmatprep.subr.mxu1 %v264_v1  ;;  %v261_v4 = vld [vmem:[%s211_s5 + $0x10] sm:$0xff]  ;;  %v260_v5 = vld [vmem:[%s211_s5 + $0x8] sm:$0xff]  ;;  %v259_v6 = vld [vmem:[%s211_s5] sm:$0xff]  ;;  %s359_s26 = sshra.s32 %s646_s9, 7  ;;  %vm384_vm2 = vcmask 7168  }
  0x4a   : > { %302 = vmatpush1.msra.mxu0 %v263_v2  ;;  %661 = vmatpush1.msra.mxu1 %v263_v2  ;;  %v256_v7 = vld [vmem:[%s1233_s1] sm:$0xff]  ;;  %v257_v8 = vld [vmem:[%s1233_s1 + $0x8] sm:$0xff]  ;;  %v258_v10 = vld [vmem:[%s1233_s1 + $0x10] sm:$0xff]  ;;  %s647_s13 = sshll.u32 %s359_s26, 3 }
  0x4b   : > { %303 = vmatprep.subr.mxu0 %v262_v3  ;;  %659 = vmatprep.subr.mxu1 %v262_v3  ;;  %s362_s23 = scalar_lea.vmem [#allocation2], %s647_s13 }
  0x4c   : > { %304 = vmatpush1.msra.mxu0 %v261_v4  ;;  %662 = vmatpush1.msra.mxu1 %v261_v4  ;;  %v369_v29 = vld [vmem:[#allocation3] sm:$0xff]  ;;  %v370_v34 = vld [vmem:[#allocation3 + $0x8] sm:$0xff] }
  0x4d   : > { %305 = vmatprep.subr.mxu0 %v260_v5  ;;  %660 = vmatprep.subr.mxu1 %v260_v5  ;;  %v388_v31 = vld [vmem:[#allocation4] sm:$0xff]  ;;  %v371_v37 = vld [vmem:[#allocation3 + $0x10] sm:$0xff] }
  0x4e   : > { %306 = vmatpush1.msra.mxu0 %v259_v6  ;;  %663 = vmatpush1.msra.mxu1 %v259_v6  ;;  %v389_v40 = vld [vmem:[#allocation4 + $0x8] sm:$0xff]  ;;  %v390_v43 = vld [vmem:[#allocation4 + $0x10] sm:$0xff] }
  0x4f   : > { %339 = vmatprep.mubr.f32.mxu0 %v941_v9  ;;  %345 = vmatprep.mubr.f32.mxu1 %v941_v9 }
  0x50   : > { %643 = vmatmul.mubr.msk.f32.vlgmr.msra.gmra.mxu0 %vm265_vm1, %v256_v7  ;;  %644 = vmatmul.mubr.msk.f32.vlgmr.msra.gmra.mxu1 %vm265_vm1, %v257_v8 }
  0x51   : > { %351 = vmatprep.mubr.f32.mxu1 %v941_v9 }
  0x54   : > { %645 = vmatmul.mubr.msk.f32.gmra.mxu1 %vm265_vm1, %v258_v10 }
 0x110   : > { %v341_v11 = vpop.f32.mrf.mxu0  ;;  %v347_v12 = vpop.f32.mrf.mxu1 }
 0x111   : > { %363 = vst [vmem:[%s362_s23] sm:$0xff] %v341_v11  ;;  %365 = vst [vmem:[%s362_s23 + $0x90] sm:$0xff] %v347_v12  ;;  %v391_v17 = vmul.f32 %v341_v11, %v341_v11  ;;  %v393_v22 = vmul.f32 %v347_v12, %v347_v12 }
 0x112   : > { %v343_v13 = vpop.f32.mrf.mxu0  ;;  %v349_v14 = vpop.f32.mrf.mxu1 }
 0x113   : > { %364 = vst [vmem:[%s362_s23 + $0x8] sm:$0xff] %v343_v13  ;;  %v392_v15 = vmul.f32 %v343_v13, %v343_v13  ;;  %366 = vst [vmem:[%s362_s23 + $0x98] sm:$0xff] %v349_v14  ;;  %v372_v16 = vadd.f32 %v343_v13, %v341_v11  ;;  %v375_v21 = vadd.f32 %v349_v14, %v347_v12 }
 0x114   : > { %v353_v18 = vpop.f32.mrf.mxu1  ;;  %v394_v23 = vmul.f32 %v349_v14, %v349_v14 }
 0x115   : > { %367 = vst [vmem:[%s362_s23 + $0x120] sm:$0xff] %v353_v18  ;;  %373 = vadd.xlane.f32.xlu0 %v372_v16  ;;  %v397_v19 = vadd.f32 %v392_v15, %v391_v17  ;;  %v395_v26 = vmul.f32 %v353_v18, %v353_v18 }
 0x116   : > { %v355_v20 = vpop.f32.mrf.mxu1  ;;  %v400_v27 = vadd.f32 %v394_v23, %v393_v22 }
 0x117   : > { %368 = vst [vmem:[%s362_s23 + $0x128] sm:$0xff] %v355_v20  ;;  %398 = vadd.xlane.f32.xlu1 %v397_v19  ;;  %v396_v24 = vmul.f32 %v355_v20, %v355_v20  ;;  %v378_v25 = vadd.f32 %v355_v20, %v353_v18 }
 0x119   : > { %376 = vadd.xlane.f32.xlu0 %v375_v21  ;;  %v403_v28 = vadd.f32 %v396_v24, %v395_v26 }
 0x11b   : > { %379 = vadd.xlane.f32.xlu1 %v378_v25 }
 0x11d   : > { %401 = vadd.xlane.f32.xlu0 %v400_v27 }
 0x11f   : > { %404 = vadd.xlane.f32.xlu1 %v403_v28 }
 0x19e   : > { %v374_v30 = vpop.xlane.xlu0 %373 }
 0x19f   : > { %v381_v32 = vadd.f32 %v374_v30, %v369_v29 }
 0x1a0   : > { %v399_v33 = vpop.xlane.xlu1 %398 }
 0x1a1   : > { %385 = vst.msk [vmem:[#allocation3] sm:$0xff] %vm384_vm2, %v381_v32  ;;  %v406_v35 = vadd.f32 %v399_v33, %v388_v31 }
 0x1a2   : > { %v377_v36 = vpop.xlane.xlu0 %376 }
 0x1a3   : > { %409 = vst.msk [vmem:[#allocation4] sm:$0xff] %vm384_vm2, %v406_v35  ;;  %v382_v38 = vadd.f32 %v377_v36, %v370_v34 }
 0x1a4   : > { %v380_v39 = vpop.xlane.xlu1 %379 }
 0x1a5   : > { %386 = vst.msk [vmem:[#allocation3 + $0x8] sm:$0xff] %vm384_vm2, %v382_v38  ;;  %v383_v41 = vadd.f32 %v380_v39, %v371_v37 }
 0x1a6   : > { %v402_v42 = vpop.xlane.xlu0 %401 }
 0x1a7   : > { %387 = vst.msk [vmem:[#allocation3 + $0x10] sm:$0xff] %vm384_vm2, %v383_v41  ;;  %v407_v44 = vadd.f32 %v402_v42, %v389_v40 }
 0x1a8   : > { %v405_v45 = vpop.xlane.xlu1 %404 }
 0x1a9   : > { %410 = vst.msk [vmem:[#allocation4 + $0x8] sm:$0xff] %vm384_vm2, %v407_v44  ;;  %v408_v46 = vadd.f32 %v405_v45, %v390_v43 }
 0x1ab   : > { %411 = vst.msk [vmem:[#allocation4 + $0x10] sm:$0xff] %vm384_vm2, %v408_v46 }
 0x1ac PF: > { %p648_p7 = scmp.ne.s32.totalorder %s922_s22, 1 }
 0x1ad   : > { %p649_p8 = scmp.ne.s32.totalorder (!%p648_p7), %s918_s21, 0 }
 0x1ae   : > { %415 = sbr.rel (%p648_p7) target bundleno = 610 (0x262), region = 52 }
 0x1b3   : > { %419 = sbr.rel (%p649_p8) target bundleno = 472 (0x1d8), region = 56 }
 0x1b8   : > { %v420_v47 = vld [vmem:[#allocation3] sm:$0xff]  ;;  %v426_v48 = vld [vmem:[#allocation4] sm:$0xff]  ;;  %v421_v51 = vld [vmem:[#allocation3 + $0x8] sm:$0xff]  ;;  %vm450_vm3 = vcmask 7168  }
 0x1b9   : > { %v423_v49 = vmul.f32 0.00043402778, %v420_v47  ;;  %v429_v50 = vmul.f32 0.00043402778, %v426_v48  ;;  %v427_v52 = vld [vmem:[#allocation4 + $0x8] sm:$0xff]  ;;  %v422_v55 = vld [vmem:[#allocation3 + $0x10] sm:$0xff] }
 0x1ba   : > { %v424_v53 = vmul.f32 0.00043402778, %v421_v51  ;;  %v430_v54 = vmul.f32 0.00043402778, %v427_v52  ;;  %v425_v57 = vmul.f32 0.00043402778, %v422_v55 }
 0x1bb   : > { %v432_v56 = vmul.f32 %v423_v49, %v423_v49  ;;  %v428_v58 = vld [vmem:[#allocation4 + $0x10] sm:$0xff]  ;;  %v444_v4 = vld [vmem:[%s1234_s2] sm:$0xff]  ;;  %v445_v5 = vld [vmem:[%s1234_s2 + $0x8] sm:$0xff] }
 0x1bc   : > { %v433_v59 = vmul.f32 %v424_v53, %v424_v53  ;;  %v431_v60 = vmul.f32 0.00043402778, %v428_v58  ;;  %v434_v62 = vmul.f32 %v425_v57, %v425_v57  ;;  %v446_v7 = vld [vmem:[%s1234_s2 + $0x10] sm:$0xff]  ;;  %v454_v12 = vld [vmem:[%s1235_s3] sm:$0xff]  ;;  %v455_v15 = vld [vmem:[%s1235_s3 + $0x8] sm:$0xff] }
 0x1bd   : > { %v435_v61 = vsub.f32 %v429_v50, %v432_v56  ;;  %v456_v17 = vld [vmem:[%s1235_s3 + $0x10] sm:$0xff] }
 0x1be   : > { %v436_v63 = vsub.f32 %v430_v54, %v433_v59  ;;  %v437_v1 = vsub.f32 %v431_v60, %v434_v62 }
 0x1bf   : > { %v438_v0 = vadd.f32 0.001, %v435_v61 }
 0x1c0   : > { %v439_v2 = vadd.f32 0.001, %v436_v63  ;;  %v440_v3 = vadd.f32 0.001, %v437_v1 }
 0x1c1   : > { %778 = vrsqrt.f32 %v438_v0 }
 0x1c2   : > { %780 = vrsqrt.f32 %v439_v2 }
 0x1c3   : > { %782 = vrsqrt.f32 %v440_v3 }
 0x1ce   : > { %v779_v6 = vpop.eup %778 }
 0x1cf   : > { %v781_v8 = vpop.eup %780  ;;  %v447_v9 = vmul.f32 %v779_v6, %v444_v4 }
 0x1d0   : > { %v783_v10 = vpop.eup %782  ;;  %v448_v11 = vmul.f32 %v781_v8, %v445_v5 }
 0x1d1   : > { %451 = vst.msk [vmem:[#allocation5] sm:$0xff] %vm450_vm3, %v447_v9  ;;  %v449_v13 = vmul.f32 %v783_v10, %v446_v7  ;;  %v457_v14 = vmul.f32 %v447_v9, %v423_v49 }
 0x1d2   : > { %452 = vst.msk [vmem:[#allocation5 + $0x8] sm:$0xff] %vm450_vm3, %v448_v11  ;;  %v458_v16 = vmul.f32 %v448_v11, %v424_v53 }
 0x1d3   : > { %453 = vst.msk [vmem:[#allocation5 + $0x10] sm:$0xff] %vm450_vm3, %v449_v13  ;;  %v460_v18 = vsub.f32 %v454_v12, %v457_v14  ;;  %v459_v19 = vmul.f32 %v449_v13, %v425_v57 }
 0x1d4   : > { %v461_v20 = vsub.f32 %v455_v15, %v458_v16 }
 0x1d5   : > { %463 = vst.msk [vmem:[#allocation6] sm:$0xff] %vm450_vm3, %v460_v18  ;;  %v462_v21 = vsub.f32 %v456_v17, %v459_v19 }
 0x1d6   : > { %464 = vst.msk [vmem:[#allocation6 + $0x8] sm:$0xff] %vm450_vm3, %v461_v20 }
 0x1d7   : > { %465 = vst.msk [vmem:[#allocation6 + $0x10] sm:$0xff] %vm450_vm3, %v462_v21 }
 0x1d8 PF: > { %v477_v23 = vld [vmem:[#allocation5] sm:$0xff]  ;;  %v942_v24 = vmov 0   ;;  %s650_s5 = sshll.u32 %s918_s21, 8 }
 0x1d9   : > { %785 = vset.pattern.permute.xlu1 %v942_v24  ;;  %784 = vset.pattern.permute.xlu0 %v942_v24  ;;  %v478_v26 = vld [vmem:[#allocation5 + $0x8] sm:$0xff]  ;;  %s467_s28 = sshra.s32 %s650_s5, 7 }
 0x1da   : > { %v479_v22 = vld [vmem:[#allocation5 + $0x10] sm:$0xff]  ;;  %482 = vperm.xlu0 %784, %v477_v23   ;;  %s651_s8 = sshll.u32 %s467_s28, 3 }
 0x1db   : > { %492 = vperm.xlu1 %785, %v479_v22   ;;  %s470_s18 = scalar_lea.vmem [#allocation2], %s651_s8 }
 0x1dc   : > { %v501_v25 = vld [vmem:[#allocation6] sm:$0xff]  ;;  %v471_v31 = vld [vmem:[%s470_s18] sm:$0xff]  ;;  %v472_v32 = vld [vmem:[%s470_s18 + $0x8] sm:$0xff] }
 0x1dd   : > { %v502_v28 = vld [vmem:[#allocation6 + $0x8] sm:$0xff]  ;;  %v476_v36 = vld [vmem:[%s470_s18 + $0x128] sm:$0xff]  ;;  %v473_v39 = vld [vmem:[%s470_s18 + $0x90] sm:$0xff] }
 0x1de   : > { %487 = vperm.xlu0 %784, %v478_v26   ;;  %v503_v27 = vld [vmem:[#allocation6 + $0x10] sm:$0xff]  ;;  %v475_v33 = vld [vmem:[%s470_s18 + $0x120] sm:$0xff]  ;;  %v474_v40 = vld [vmem:[%s470_s18 + $0x98] sm:$0xff] }
 0x1df   : > { %506 = vperm.xlu1 %785, %v501_v25  }
 0x1e2   : > { %511 = vperm.xlu0 %784, %v502_v28  }
 0x1e3   : > { %516 = vperm.xlu1 %785, %v503_v27  }
 0x255   : > { %v483_v30 = vpop.permute.xlu0 %482 }
 0x256   : > { %v493_v29 = vpop.permute.xlu1 %492  ;;  %v495_v34 = vmul.f32 %v483_v30, %v471_v31  ;;  %v496_v35 = vmul.f32 %v483_v30, %v472_v32 }
 0x257   : > { %v499_v43 = vmul.f32 %v493_v29, %v475_v33  ;;  %v500_v44 = vmul.f32 %v493_v29, %v476_v36 }
 0x259   : > { %v488_v38 = vpop.permute.xlu0 %487 }
 0x25a   : > { %v507_v37 = vpop.permute.xlu1 %506  ;;  %v497_v45 = vmul.f32 %v488_v38, %v473_v39  ;;  %v498_v46 = vmul.f32 %v488_v38, %v474_v40 }
 0x25b   : > { %v519_v41 = vadd.f32 %v507_v37, %v495_v34  ;;  %v520_v42 = vadd.f32 %v507_v37, %v496_v35 }
 0x25d   : > { %525 = vst [vmem:[%s1107_s6] sm:$0xff] %v519_v41  ;;  %526 = vst [vmem:[%s1107_s6 + $0x8] sm:$0xff] %v520_v42  ;;  %v512_v48 = vpop.permute.xlu0 %511 }
 0x25e   : > { %v517_v47 = vpop.permute.xlu1 %516  ;;  %v521_v51 = vadd.f32 %v512_v48, %v497_v45  ;;  %v522_v52 = vadd.f32 %v512_v48, %v498_v46 }
 0x25f   : > { %v523_v49 = vadd.f32 %v517_v47, %v499_v43  ;;  %v524_v50 = vadd.f32 %v517_v47, %v500_v44 }
 0x260   : > { %527 = vst [vmem:[%s1107_s6 + $0x10] sm:$0xff] %v521_v51  ;;  %528 = vst [vmem:[%s1107_s6 + $0x18] sm:$0xff] %v522_v52 }
 0x261   : > { %529 = vst [vmem:[%s1107_s6 + $0x20] sm:$0xff] %v523_v49  ;;  %530 = vst [vmem:[%s1107_s6 + $0x28] sm:$0xff] %v524_v50 }
 0x262 PF: > { %s539_s10 = smul.u32 %s918_s21, %s922_s22  ;;  %s546_s7 = sshll.u32 %s1107_s6, 4  ;;  %s1163_s7 = int_to_ptr.vmem [resolvable:$true] %s546_s7 }
 0x263   : > { %s1172_s13 = scalar_lea.sflag [#allocation9], %s233_s14  ;;  %s814_s23 = scalar_lea.vmem %s1163_s7, 768 }
 0x264   : > { %s657_s12 = sshll.u32 %s539_s10, 8  ;;  %p815_p9 = scmp.ne.s32.totalorder %s1163_s7, %s814_s23 }
 0x265   : > { %s1168_s26 = scalar_lea.hbm %s1236_s4, %s657_s12  ;;  %s943_s21 = smov [#allocation10]  }
 0x266   : > { %p816_p10 = pnand %p815_p9, %p1067_p12  ;;  %s818_s22 = sshll.u32 %s943_s21, 4  ;;  %s819_s22 = int_to_ptr.vmem [resolvable:$false] %s818_s22 }
 0x267   : > { %s820_s6 = scalar_lea.vmem %s819_s22, 1536  ;;  %p821_p11 = scmp.lt.s32.totalorder %s1163_s7, %s819_s22 }
 0x268   : > { %p817_p5 = pneg %p816_p10  ;;  %p822_p13 = scmp.lt.s32.totalorder %s820_s6, %s814_s23 }
 0x26a   : > { %p823_p0 = por %p822_p13, %p821_p11 }
 0x26c   : > { %p824_p1 = pnand %p823_p0, %p817_p5 }
 0x26e   : > { %827 = shalt.err (!%p824_p1)
}
 0x26f   : > { %s828_s14 = scalar_lea.hbm %s1168_s26, 768  ;;  %s832_s8 = scalar_lea.hbm %s1236_s4, 6912 }
 0x270   : > { %p829_p6 = scmp.ne.s32.totalorder %s1168_s26, %s828_s14  ;;  %p833_p7 = scmp.lt.s32.totalorder %s1168_s26, %s1236_s4 }
 0x271   : > { %p834_p8 = scmp.lt.s32.totalorder %s832_s8, %s828_s14 }
 0x272   : > { %p830_p3 = pnand %p829_p6, %p1067_p12 }
 0x273   : > { %p835_p9 = por %p834_p8, %p833_p7 }
 0x274   : > { %p831_p4 = pneg %p830_p3 }
 0x276   : > { %p836_p10 = pnand %p835_p9, %p831_p4 }
 0x278   : > { %839 = shalt.err (!%p836_p10)
}
 0x279   : > { %s944_s12 = smov 256   ;;  %s945_s29 = smov 2304  }
 0x27a   : > { %s946_s9 = smov 16  }
 0x27b   : > { %669 = dma.vmem_to_hbm [thread:$0]  (%p1067_p12), %s1163_s7, 768, %s1168_s26, %s1172_s13, %s944_s12, %s945_s29, %s946_s9  }
 0x27c PF: > { %p680_p5 = scmp.ge.s32.totalorder %s934_s25, 2  ;;  %s561_s23 = sand.u32 1, %s894_s15  }
 0x27d   : > { %s562_s21 = scalar_lea.sflag [#allocation9], %s561_s23 }
 0x27e   : > { %p676_p11 = pnand %p680_p5, %p1077_p2 }
 0x280   : > { %p677_p13 = pneg %p676_p11 }
 0x282   : > { %889 = dma.done.wait (%p677_p13), %s562_s21, 768  }
 0x283   : > { %891 = vsyncadd (%p677_p13), %s562_s21, 4294966528  ;;  %s20_s25 = sadd.s32 1, %s934_s25   ;;  %s1251_s21 = sld [smem:[#allocation13_spill]] }
 0x284   : > { %p17_p0 = scmp.ge.s32.totalorder %s20_s25, 20   ;;  %s1252_s22 = sld [smem:[#allocation14_spill]] }
 0x285   : > { %s1253_s23 = sld [smem:[#allocation15_spill]]  ;;  %s1255_s15 = smov %s898_s16 }
 0x286   : > { %s1254_s24 = sld [smem:[#allocation16_spill]]  ;;  %s1256_s16 = smov %s902_s17 }
 0x287   : > { %s1257_s17 = smov %s1062_s30  ;;  %s1258_s18 = smov %s910_s19 }
 0x288   : > { %s1259_s19 = smov %s914_s20  ;;  %s1260_s20 = smov %s1065_s27 }
 0x289   :  { %19 = sbr.rel (!%p17_p0) target bundleno = 9 (0x9), region = 99 }
 0x28e   :  { %567 = vsyncpa [#allocation8], 1 }
 0x28f   :  { %569 = vsyncpa [#allocation8 + $0x1], 1 }
 0x290   :  { %570 = vsyncpa [#allocation9], 1 }
 0x291   :  { %572 = vsyncpa [#allocation9 + $0x1], 1 }

</bundles_post_ra>
